<compile_context>
chip_gen: v6e
topology: v6e:2x2x1
jax: 0.10.0
libtpu: 0.0.40
codegen_flags: <defaults>
</compile_context>

<pallas_src>
import functools

import jax
import jax.numpy as jnp
from jax.experimental import pallas as pl
from jax.experimental.pallas import tpu as pltpu


def _tile_cap():
    """Spatial-tile cap tuned per TPU generation (by VMEM capacity)."""
    try:
        vmem_bytes = pltpu.get_tpu_info().vmem_capacity_bytes
    except Exception:
        vmem_bytes = 64 * 1024 * 1024
    # v5e / v6e: 128 MiB VMEM -> go wide; v7x: 64 MiB -> keep headroom.
    return 8192 if vmem_bytes >= (96 << 20) else 4096


def _pick_tile(n_total, cap):
    """Largest lane-aligned (multiple-of-128) divisor of n_total that fits the cap."""
    if n_total <= cap:
        return n_total
    for t in range((cap // 128) * 128, 0, -128):
        if n_total % t == 0:
            return t
    # No lane-aligned divisor <= cap: fall back to one full-width tile
    # (block dim == full array dim is always legal).
    return n_total


def _cross_attention_kernel(x_ref, wq_ref, wy_ref, bo_ref, out_ref, *, heads, dim_head):
    """One (batch, spatial-tile) step: q projection, per-head softmax, folded output."""
    x = x_ref[0].astype(jnp.bfloat16)                              # (C, TN)
    # q = Wq @ x : (HID, TN), lane-dense, bf16 operands, f32 accumulate.
    q = jnp.dot(wq_ref[...], x, preferred_element_type=jnp.float32)
    tn = q.shape[-1]

    # softmax over dim_head (per head), in f32.
    q3 = q.reshape(heads, dim_head, tn)
    q3 = jnp.exp(q3 - jnp.max(q3, axis=1, keepdims=True))
    inv = pl.reciprocal(jnp.sum(q3, axis=1, keepdims=True), approx=True)   # EUP slot
    qs = (q3 * inv).reshape(heads * dim_head, tn).astype(jnp.bfloat16)

    # y = W_y[b] @ softmax(q) + bo   (scale and Wo@context already folded into W_y).
    y = jnp.dot(wy_ref[0], qs, preferred_element_type=jnp.float32) + bo_ref[...]
    out_ref[0] = y.astype(out_ref.dtype)


def _precompute_wy(kv, wkv, wo, *, heads, dim_head, scale):
    """Batch-only kv path folded with Wo: W_y[b] = scale * Wo @ blockdiag_h(ct[b,h]^T)."""
    B, M, _ = kv.shape
    D = dim_head
    HID = heads * D
    kvp = jnp.einsum('bmc,oc->bom', kv, wkv)                 # (B, 2*HID, M)
    k = kvp[:, :HID].reshape(B, heads, D, M)                 # (B, h, d, m)
    v = kvp[:, HID:].reshape(B, heads, D, M)                 # (B, h, e, m)
    k = jax.nn.softmax(k, axis=-1)                           # softmax over kv tokens
    ct = jnp.einsum('bhdm,bhem->bhde', k, v)                 # (B, h, d, e)
    # block-diagonal map: BD[(h,e), (g,d)] = delta_{hg} * ct[h, d, e]
    bd = jnp.einsum('hg,bhde->bhegd', jnp.eye(heads, dtype=ct.dtype), ct)
    bd = bd.reshape(B, HID, HID)
    return scale * jnp.einsum('co,boi->bci', wo, bd)         # (B, C, HID)


def cross_attention_forward(x, kv, params, *, heads=4, dim_head=32):
    """x: (B, C, F, H, W); kv: (B, N_kv, D_con). Returns (B, C, F, H, W)."""
    B, C, F_, H_, W_ = x.shape
    HID = heads * dim_head
    N = F_ * H_ * W_
    scale = dim_head ** (-0.5)

    # --- batch-only kv path, hoisted out of the grid (tiny; plain JAX) -------
    wy = _precompute_wy(kv.astype(jnp.float32),
                        params["wkv"].astype(jnp.float32),
                        params["wo"].astype(jnp.float32),
                        heads=heads, dim_head=dim_head, scale=scale)
    wy = wy.astype(jnp.bfloat16)                             # (B, C, HID)
    wq = params["wq"].astype(jnp.bfloat16)                   # (HID, C)
    bo = params["bo"].reshape(C, 1).astype(jnp.float32)      # (C, 1)

    # --- lane-dense activations: frames flattened into the lane axis (free reshape)
    x_r = x.reshape(B, C, N).astype(jnp.float32)
    # TODO(synk): in a real pipeline keep activations bf16 in HBM to halve x traffic.

    tn = _pick_tile(N, _tile_cap())
    grid = (B, N // tn)

    kernel = functools.partial(_cross_attention_kernel, heads=heads, dim_head=dim_head)
    out = pl.pallas_call(
        kernel,
        out_shape=jax.ShapeDtypeStruct((B, C, N), jnp.float32),
        grid=grid,
        in_specs=[
            pl.BlockSpec((1, C, tn), lambda b, n: (b, 0, n)),      # x tile
            pl.BlockSpec((HID, C), lambda b, n: (0, 0)),           # Wq (constant)
            pl.BlockSpec((1, C, HID), lambda b, n: (b, 0, 0)),     # W_y (per batch)
            pl.BlockSpec((C, 1), lambda b, n: (0, 0)),             # bo (constant)
        ],
        out_specs=pl.BlockSpec((1, C, tn), lambda b, n: (b, 0, n)),
        compiler_params=pltpu.CompilerParams(
            dimension_semantics=("parallel", "parallel"),
            vmem_limit_bytes=48 * 1024 * 1024),
    )(x_r, wq, wy, bo)

    return out.reshape(B, C, F_, H_, W_).astype(x.dtype)


def cross_attention_reference(x, kv, params, *, heads=4, dim_head=32):
    """Pure-JAX reference mirroring the PyTorch forward."""
    B, C, F_, H_, W_ = x.shape
    HID = heads * dim_head
    scale = dim_head ** (-0.5)
    HW = H_ * W_
    xf = jnp.transpose(x, (0, 2, 1, 3, 4)).reshape(B * F_, C, HW)
    q = jnp.einsum('oc,bcn->bon', params["wq"], xf)                               # (BF, HID, HW)
    kvf = jnp.broadcast_to(kv[:, None], (B, F_) + kv.shape[1:]).reshape(
        B * F_, kv.shape[1], kv.shape[2])
    kvp = jnp.einsum('bmc,oc->bmo', kvf, params["wkv"])                           # (BF, N_kv, 2*HID)
    k, v = kvp[..., :HID], kvp[..., HID:]
    k = jnp.transpose(k.reshape(B * F_, -1, heads, dim_head), (0, 2, 3, 1))       # (BF, h, d, m)
    v = jnp.transpose(v.reshape(B * F_, -1, heads, dim_head), (0, 2, 3, 1))
    q = q.reshape(B * F_, heads, dim_head, HW)
    q = jax.nn.softmax(q, axis=-2) * scale
    k = jax.nn.softmax(k, axis=-1)
    context = jnp.einsum('bhdm,bhem->bhde', k, v)
    out = jnp.einsum('bhde,bhdn->bhen', context, q).reshape(B * F_, HID, HW)
    y = jnp.einsum('oc,bcn->bon', params["wo"], out) + params["bo"][None, :, None]
    return jnp.transpose(y.reshape(B, F_, C, H_, W_), (0, 2, 1, 3, 4))


if __name__ == "__main__":
    B, C, F_, H_, W_ = 2, 4, 2, 16, 16        # (batch, dim, frames, spatial, spatial)
    heads, dim_head = 4, 32                   # hidden_dim = 128
    n_kv, d_con = 8, 8                        # conditioning sequence

    key = jax.random.PRNGKey(0)
    kx, kkv, k1, k2, k3, k4 = jax.random.split(key, 6)
    x = jax.random.normal(kx, (B, C, F_, H_, W_), jnp.float32)
    kv = jax.random.normal(kkv, (B, n_kv, d_con), jnp.float32)
    params = {
        "wq": 0.1 * jax.random.normal(k1, (heads * dim_head, C), jnp.float32),          # Conv2d(dim, hid, 1, bias=False)
        "wkv": 0.1 * jax.random.normal(k2, (2 * heads * dim_head, d_con), jnp.float32),  # Linear(dim_con, 2*hid, bias=False)
        "wo": 0.1 * jax.random.normal(k3, (C, heads * dim_head), jnp.float32),           # Conv2d(hid, dim, 1)
        "bo": 0.1 * jax.random.normal(k4, (C,), jnp.float32),
    }

    fwd = jax.jit(functools.partial(cross_attention_forward, heads=heads, dim_head=dim_head))
    y = fwd(x, kv, params)
    jax.block_until_ready(y)

    y_ref = cross_attention_reference(x, kv, params, heads=heads, dim_head=dim_head)
    assert y.shape == (B, C, F_, H_, W_)
    assert bool(jnp.all(jnp.isfinite(y)))
    assert bool(jnp.allclose(y, y_ref, atol=2e-2, rtol=2e-2))
    print("KERNEL_OK")
</pallas_src>

<mosaic_0001>
module attributes {stable_mosaic.version = 11 : i64} {
  func.func @_cross_attention_kernel(%arg0: i32, %arg1: i32, %arg2: memref<1x4x512xf32, #tpu.memory_space<vmem>>, %arg3: memref<128x4xbf16, #tpu.memory_space<vmem>>, %arg4: memref<1x4x128xbf16, #tpu.memory_space<vmem>>, %arg5: memref<4x1xf32, #tpu.memory_space<vmem>>, %arg6: memref<1x4x512xf32, #tpu.memory_space<vmem>>) attributes {dimension_semantics = [#tpu.dimension_semantics<parallel>, #tpu.dimension_semantics<parallel>], iteration_bounds = array<i64: 2, 1>, scalar_prefetch = 0 : i64, scratch_operands = 0 : i64, tpu.core_type = #tpu.core_type<tc>, window_params = [{transform_indices = @transform_0, window_bounds = array<i64: 1, 4, 512>}, {pipeline_mode = #tpu.pipeline_mode<synchronous>, transform_indices = @transform_1, window_bounds = array<i64: 128, 4>}, {transform_indices = @transform_2, window_bounds = array<i64: 1, 4, 128>}, {pipeline_mode = #tpu.pipeline_mode<synchronous>, transform_indices = @transform_3, window_bounds = array<i64: 4, 1>}, {transform_indices = @transform_4, window_bounds = array<i64: 1, 4, 512>}]} {
    %c0 = arith.constant 0 : index
    %c0_0 = arith.constant 0 : index
    %c0_1 = arith.constant 0 : index
    %0 = vector.load %arg2[%c0, %c0_0, %c0_1] : memref<1x4x512xf32, #tpu.memory_space<vmem>>, vector<1x4x512xf32>
    %1 = vector.shape_cast %0 : vector<1x4x512xf32> to vector<4x512xf32>
    %2 = arith.truncf %1 : vector<4x512xf32> to vector<4x512xbf16>
    %c0_2 = arith.constant 0 : index
    %c0_3 = arith.constant 0 : index
    %3 = vector.load %arg3[%c0_2, %c0_3] : memref<128x4xbf16, #tpu.memory_space<vmem>>, vector<128x4xbf16>
    %cst = arith.constant dense<0.000000e+00> : vector<128x512xf32>
    %4 = tpu.matmul %3, %2, %cst {dimension_numbers = #tpu.dot_dimension_numbers<[1], [0], [0], [1], [0, 0, 1, 1], [], []>} : vector<128x4xbf16>, vector<4x512xbf16>, vector<128x512xf32> -> vector<128x512xf32>
    %5 = vector.shape_cast %4 : vector<128x512xf32> to vector<4x32x512xf32>
    %cst_4 = arith.constant dense<0xFF800000> : vector<4x512xf32>
    %6 = vector.multi_reduction <maximumf>, %5, %cst_4 [1] : vector<4x32x512xf32> to vector<4x512xf32>
    %7 = vector.shape_cast %6 : vector<4x512xf32> to vector<4x1x512xf32>
    %8 = vector.broadcast %7 : vector<4x1x512xf32> to vector<4x32x512xf32>
    %9 = arith.subf %5, %8 : vector<4x32x512xf32>
    %10 = math.exp %9 : vector<4x32x512xf32>
    %cst_5 = arith.constant dense<0.000000e+00> : vector<4x512xf32>
    %11 = vector.multi_reduction <add>, %10, %cst_5 [1] : vector<4x32x512xf32> to vector<4x512xf32>
    %12 = vector.shape_cast %11 : vector<4x512xf32> to vector<4x1x512xf32>
    %13 = tpu.reciprocal %12 {approx = true} : vector<4x1x512xf32> -> vector<4x1x512xf32>
    %14 = vector.broadcast %13 : vector<4x1x512xf32> to vector<4x32x512xf32>
    %15 = arith.mulf %10, %14 : vector<4x32x512xf32>
    %16 = vector.shape_cast %15 : vector<4x32x512xf32> to vector<128x512xf32>
    %17 = arith.truncf %16 : vector<128x512xf32> to vector<128x512xbf16>
    %c0_6 = arith.constant 0 : index
    %c0_7 = arith.constant 0 : index
    %c0_8 = arith.constant 0 : index
    %18 = vector.load %arg4[%c0_6, %c0_7, %c0_8] : memref<1x4x128xbf16, #tpu.memory_space<vmem>>, vector<1x4x128xbf16>
    %19 = vector.shape_cast %18 : vector<1x4x128xbf16> to vector<4x128xbf16>
    %cst_9 = arith.constant dense<0.000000e+00> : vector<4x512xf32>
    %20 = tpu.matmul %19, %17, %cst_9 {dimension_numbers = #tpu.dot_dimension_numbers<[1], [0], [0], [1], [0, 0, 1, 1], [], []>} : vector<4x128xbf16>, vector<128x512xbf16>, vector<4x512xf32> -> vector<4x512xf32>
    %c0_10 = arith.constant 0 : index
    %c0_11 = arith.constant 0 : index
    %21 = vector.load %arg5[%c0_10, %c0_11] : memref<4x1xf32, #tpu.memory_space<vmem>>, vector<4x1xf32>
    %22 = vector.broadcast %21 : vector<4x1xf32> to vector<4x512xf32>
    %23 = arith.addf %20, %22 : vector<4x512xf32>
    %c0_12 = arith.constant 0 : index
    %c0_13 = arith.constant 0 : index
    %c0_14 = arith.constant 0 : index
    %24 = vector.load %arg6[%c0_12, %c0_13, %c0_14] : memref<1x4x512xf32, #tpu.memory_space<vmem>>, vector<1x4x512xf32>
    %25 = vector.shape_cast %24 : vector<1x4x512xf32> to vector<4x512xf32>
    %26 = vector.shape_cast %23 : vector<4x512xf32> to vector<1x4x512xf32>
    tpu.vector_store %arg6[%c0_12, %c0_13, %c0_14], %26 {strides = array<i32>} : memref<1x4x512xf32, #tpu.memory_space<vmem>>, vector<1x4x512xf32>,
    return
  }
  func.func @transform_0(%arg0: i32, %arg1: i32) -> (i32, i32, i32) {
    %c0_i32 = arith.constant 0 : i32
    %c0_i32_0 = arith.constant 0 : i32
    return %arg0, %c0_i32, %arg1 : i32, i32, i32
  }
  func.func @transform_1(%arg0: i32, %arg1: i32) -> (i32, i32) {
    %c0_i32 = arith.constant 0 : i32
    %c0_i32_0 = arith.constant 0 : i32
    %c0_i32_1 = arith.constant 0 : i32
    return %c0_i32, %c0_i32_0 : i32, i32
  }
  func.func @transform_2(%arg0: i32, %arg1: i32) -> (i32, i32, i32) {
    %c0_i32 = arith.constant 0 : i32
    %c0_i32_0 = arith.constant 0 : i32
    %c0_i32_1 = arith.constant 0 : i32
    return %arg0, %c0_i32, %c0_i32_0 : i32, i32, i32
  }
  func.func @transform_3(%arg0: i32, %arg1: i32) -> (i32, i32) {
    %c0_i32 = arith.constant 0 : i32
    %c0_i32_0 = arith.constant 0 : i32
    %c0_i32_1 = arith.constant 0 : i32
    return %c0_i32, %c0_i32_0 : i32, i32
  }
  func.func @transform_4(%arg0: i32, %arg1: i32) -> (i32, i32, i32) {
    %c0_i32 = arith.constant 0 : i32
    %c0_i32_0 = arith.constant 0 : i32
    return %arg0, %c0_i32, %arg1 : i32, i32, i32
  }
}

</mosaic_0001>

<bundles_post_ra>
// kernel: div.5
= control target key start
LH: loop header
LB: loop body
LE: loop exit
PB: predicated region body
PF: predicated region fallthrough
CT: control target
= control target key end

     0   :  { %s47_s8 = smov 32   ;;  %vm8_vm0 = vcmask 261120   ;;  %s48_s9 = smov 64   ;;  %s68_s0 = inlined_call_operand.vmem [shape: f32[2,128], index: 0, kind: input, shape index: {}]   ;;  %s69_s1 = inlined_call_operand.vmem [shape: f32[2,4,32], index: 1, kind: output, shape index: {}]  }
   0x1   :  { %v5_v0 = vld [vmem:[%s68_s0] sm:$0x3]  ;;  %s46_s0 = smov 96  }
   0x2   :  { %6 = vst [vmem:[#allocation1] sm:$0x3] %v5_v0 }
   0x9   :  { %v10_v1 = vld [vmem:[#allocation1] sm:$0x3]  }
   0xa   :  { %v22_v2 = vld [vmem:[#allocation1] sm:$0x3]   ;;  %11 = vrot.lane.b32.xlu0 %v10_v1, %s46_s0 }
   0xb   :  { %23 = vrot.lane.b32.xlu1 %v22_v2, %s47_s8  ;;  %v7_v3 = vld [vmem:[#allocation1] sm:$0x3]  }
   0xc   :  { %v16_v4 = vld [vmem:[#allocation1] sm:$0x3]   ;;  %9 = vst.msk [vmem:[#allocation0] ss:$8 sm:$0x3] %vm8_vm0, %v7_v3  }
   0xe   :  { %17 = vrot.lane.b32.xlu0 %v16_v4, %s48_s9 }
  0x7c   :  { %v12_v5 = vpop.permute.xlu0 %11  }
  0x7d   :  { %v24_v6 = vpop.permute.xlu1 %23   ;;  %15 = vst.msk [vmem:[#allocation0 + $0x1] ss:$8 sm:$0x3] %vm8_vm0, %v12_v5  }
  0x7e   :  { %27 = vst.msk [vmem:[#allocation0 + $0x3] ss:$8 sm:$0x3] %vm8_vm0, %v24_v6  }
  0x80   :  { %v18_v7 = vpop.permute.xlu0 %17  }
  0x81   :  { %21 = vst.msk [vmem:[#allocation0 + $0x2] ss:$8 sm:$0x3] %vm8_vm0, %v18_v7  }
  0x88   :  { %v32_v8 = vld [vmem:[#allocation0] sm:$0xf]  ;;  %v37_v9 = vld [vmem:[#allocation0 + $0x8] sm:$0xf] }
  0x89   :  { %35 = vst [vmem:[%s69_s1] sm:$0xf] %v32_v8  ;;  %42 = vst [vmem:[%s69_s1 + $0x4] sm:$0xf] %v37_v9 }

// kernel: cross_attention_forward.1
= control target key start
LH: loop header
LB: loop body
LE: loop exit
PB: predicated region body
PF: predicated region fallthrough
CT: control target
= control target key end

     0   :  { %s1663_s15 = smov 0   ;;  %s1665_s16 = smov 0   ;;  %s2470_s0 = inlined_call_operand.vmem [shape: f32[2,4,512], index: 0, kind: input, shape index: {}]   ;;  %s2471_s1 = inlined_call_operand.vmem [shape: bf16[128,4], index: 1, kind: input, shape index: {}]   ;;  %s2472_s2 = inlined_call_operand.vmem [shape: bf16[2,4,128], index: 2, kind: input, shape index: {}]   ;;  %s2473_s3 = inlined_call_operand.vmem [shape: f32[4,1], index: 3, kind: input, shape index: {}]   ;;  %s2474_s4 = inlined_call_operand.vmem [shape: f32[2,4,512], index: 4, kind: output, shape index: {}]  }
   0x1   :  { %s1667_s17 = smov 0  }
   0x2 LB: > { %s26_s18 = sadd.s32 1, %s1631_s16  ;;  %p1381_p0 = scmp.ge.s32.totalorder %s1635_s17, 1  ;;  %s1635_s17 = sphi %s1667_s17, %s14_s17   ;;  %s1631_s16 = sphi %s1665_s16, %s2630_s16   ;;  %s1627_s15 = sphi %s1663_s15, %s2629_s15  }
   0x3   : > { %p28_p1 = scmp.ge.s32.totalorder %s26_s18, 2  ;;  %p192_p2 = scmp.lt.s32.totalorder %s1635_s17, 3 }
   0x5   : > { %s2632_s18 = smov (%p28_p1, %s26_s18), 0  ;;  %p193_p3 = pnand %p1381_p0, %p192_p2 }
   0x7   : > { %196 = sbr.rel (%p193_p3) target bundleno = 632 (0x278), region = 36 }
   0xc   : > { %p231_p4 = scmp.lt.s32.totalorder %s1627_s15, 1  ;;  %v1637_v0 = vmov 0   ;;  %vm348_vm0 = vcmask 1041408   ;;  %v1445_v11 = vld [vmem:[%s2471_s1] sm:$0xff]   ;;  %vm323_vm1 = vcmask 31744   ;;  %v1446_v12 = vld [vmem:[%s2471_s1 + $0x8] sm:$0xff]  }
   0xd   : > { %393 = vmatprep.mubr.bf16.mxu0 %v1637_v0  ;;  %506 = vmatprep.mubr.bf16.mxu1 %v1637_v0  ;;  %v1447_v13 = vld [vmem:[%s2471_s1 + $0x10] sm:$0xff]   ;;  %v1448_v14 = vld [vmem:[%s2471_s1 + $0x18] sm:$0xff]   ;;  %v1449_v15 = vld [vmem:[%s2471_s1 + $0x20] sm:$0xff]  }
   0xe   : > { %s2634_s15 = smov (!%p231_p4, %s1627_s15), 1  ;;  %1442 = vset.pattern.permute.xlu0 %v1637_v0  ;;  %v1450_v16 = vld [vmem:[%s2471_s1 + $0x28] sm:$0xff]   ;;  %v1451_v17 = vld [vmem:[%s2471_s1 + $0x30] sm:$0xff]   ;;  %v1452_v18 = vld [vmem:[%s2471_s1 + $0x38] sm:$0xff]  }
   0xf   : > { %s1415_s19 = sshll.u32 %s2634_s15, 4  ;;  %s1384_s20 = sshll.u32 %s2634_s15, 1 }
  0x10   : > { %s238_s22 = scalar_lea.vmem %s2470_s0, %s1415_s19  ;;  %s243_s23 = scalar_lea.vmem %s2472_s2, %s1384_s20 }
  0x11   : > { %v255_v1 = vld [vmem:[%s238_s22] sm:$0xff]  ;;  %v256_v2 = vld [vmem:[%s238_s22 + $0x8] sm:$0xff]  ;;  %s252_s26 = scalar_lea.vmem %s2474_s4, %s1415_s19 }
  0x12   : > { %v259_v3 = vcombine.high %v255_v1, %v255_v1  ;;  %v260_v4 = vcombine.high %v256_v2, %v256_v2  ;;  %v263_v5 = vpack.c.bf16 %v255_v1, %v255_v1  ;;  %v265_v6 = vpack.c.bf16 %v256_v2, %v256_v2 }
  0x14   : > { %v264_v7 = vpack.c.bf16 %v259_v3, %v259_v3  ;;  %v266_v8 = vpack.c.bf16 %v260_v4, %v260_v4  ;;  %v350_v9 = vsel %vm348_vm0, %v263_v5, 0  ;;  %v356_v10 = vsel %vm348_vm0, %v265_v6, 0 }
  0x16   : > { %1395 = vmatprep.subr.msk.bf16.mxu0 %vm348_vm0, %v264_v7  ;;  %1404 = vmatprep.subr.msk.bf16.mxu1 %vm348_vm0, %v266_v8 }
  0x17   : > { %376 = vmatpush1.bf16.msra.mxu0 %v350_v9  ;;  %489 = vmatpush1.bf16.msra.mxu1 %v356_v10 }
  0x1a   : > { %1396 = vmatmul.mubr.msk.bf16.vlgmr.msra.gmra.mxu0 %vm323_vm1, %v1445_v11  ;;  %1405 = vmatmul.mubr.msk.bf16.vlgmr.msra.gmra.mxu1 %vm323_vm1, %v1445_v11 }
  0x1b   : > { %403 = vmatprep.mubr.bf16.mxu0 %v1637_v0  ;;  %516 = vmatprep.mubr.bf16.mxu1 %v1637_v0 }
  0x22   : > { %1397 = vmatmul.mubr.msk.bf16.gmra.mxu0 %vm323_vm1, %v1446_v12  ;;  %1406 = vmatmul.mubr.msk.bf16.gmra.mxu1 %vm323_vm1, %v1446_v12 }
  0x23   : > { %413 = vmatprep.mubr.bf16.mxu0 %v1637_v0  ;;  %526 = vmatprep.mubr.bf16.mxu1 %v1637_v0 }
  0x2a   : > { %1398 = vmatmul.mubr.msk.bf16.gmra.mxu0 %vm323_vm1, %v1447_v13  ;;  %1407 = vmatmul.mubr.msk.bf16.gmra.mxu1 %vm323_vm1, %v1447_v13 }
  0x2b   : > { %423 = vmatprep.mubr.bf16.mxu0 %v1637_v0  ;;  %536 = vmatprep.mubr.bf16.mxu1 %v1637_v0 }
  0x32   : > { %1399 = vmatmul.mubr.msk.bf16.gmra.mxu0 %vm323_vm1, %v1448_v14  ;;  %1408 = vmatmul.mubr.msk.bf16.gmra.mxu1 %vm323_vm1, %v1448_v14 }
  0x33   : > { %433 = vmatprep.mubr.bf16.mxu0 %v1637_v0  ;;  %546 = vmatprep.mubr.bf16.mxu1 %v1637_v0 }
  0x3a   : > { %1400 = vmatmul.mubr.msk.bf16.gmra.mxu0 %vm323_vm1, %v1449_v15  ;;  %1409 = vmatmul.mubr.msk.bf16.gmra.mxu1 %vm323_vm1, %v1449_v15 }
  0x3b   : > { %443 = vmatprep.mubr.bf16.mxu0 %v1637_v0  ;;  %556 = vmatprep.mubr.bf16.mxu1 %v1637_v0 }
  0x42   : > { %1401 = vmatmul.mubr.msk.bf16.gmra.mxu0 %vm323_vm1, %v1450_v16  ;;  %1410 = vmatmul.mubr.msk.bf16.gmra.mxu1 %vm323_vm1, %v1450_v16 }
  0x43   : > { %453 = vmatprep.mubr.bf16.mxu0 %v1637_v0  ;;  %566 = vmatprep.mubr.bf16.mxu1 %v1637_v0 }
  0x4a   : > { %1402 = vmatmul.mubr.msk.bf16.gmra.mxu0 %vm323_vm1, %v1451_v17  ;;  %1411 = vmatmul.mubr.msk.bf16.gmra.mxu1 %vm323_vm1, %v1451_v17 }
  0x4b   : > { %463 = vmatprep.mubr.bf16.mxu0 %v1637_v0  ;;  %576 = vmatprep.mubr.bf16.mxu1 %v1637_v0 }
  0x52   : > { %1403 = vmatmul.mubr.msk.bf16.gmra.mxu0 %vm323_vm1, %v1452_v18  ;;  %1412 = vmatmul.mubr.msk.bf16.gmra.mxu1 %vm323_vm1, %v1452_v18 }
  0x53   : > { %1218 = vmatprep.mubr.bf16.mxu0 %v1637_v0  ;;  %1259 = vmatprep.mubr.bf16.mxu1 %v1637_v0 }
  0xda   : > { %v1729_v19 = vpop.f32.mrf.mxu0  ;;  %v1731_v20 = vpop.f32.mrf.mxu1 }
  0xdc   : > { %v1733_v21 = vpop.f32.mrf.mxu0  ;;  %v1735_v22 = vpop.f32.mrf.mxu1 }
  0xde   : > { %v1737_v23 = vpop.f32.mrf.mxu0  ;;  %v1739_v24 = vpop.f32.mrf.mxu1 }
  0xdf   : > { %v587_v25 = vmax.f32 %v1729_v19, %v1737_v23  ;;  %v605_v26 = vmax.f32 %v1731_v20, %v1739_v24 }
  0xe0   : > { %v1745_v27 = vpop.f32.mrf.mxu0  ;;  %v1747_v28 = vpop.f32.mrf.mxu1 }
  0xe1   : > { %v596_v29 = vmax.f32 %v1733_v21, %v1745_v27  ;;  %v614_v30 = vmax.f32 %v1735_v22, %v1747_v28 }
  0xe2   : > { %v1753_v31 = vpop.f32.mrf.mxu0  ;;  %v1755_v32 = vpop.f32.mrf.mxu1 }
  0xe3   : > { %v588_v33 = vmax.f32 %v587_v25, %v1753_v31  ;;  %v606_v34 = vmax.f32 %v605_v26, %v1755_v32 }
  0xe4   : > { %v1759_v35 = vpop.f32.mrf.mxu0  ;;  %v1761_v36 = vpop.f32.mrf.mxu1 }
  0xe5   : > { %v597_v37 = vmax.f32 %v596_v29, %v1759_v35  ;;  %v615_v38 = vmax.f32 %v614_v30, %v1761_v36 }
  0xe6   : > { %v409_v39 = vpop.f32.mrf.mxu0  ;;  %v1765_v40 = vpop.f32.mrf.mxu1 }
  0xe7   : > { %v589_v41 = vmax.f32 %v588_v33, %v409_v39  ;;  %v607_v42 = vmax.f32 %v606_v34, %v1765_v40 }
  0xe8   : > { %v1768_v43 = vpop.f32.mrf.mxu0  ;;  %v1770_v44 = vpop.f32.mrf.mxu1 }
  0xe9   : > { %v590_v45 = vrot.slane %v589_v41, 4  ;;  %v608_v46 = vrot.slane %v607_v42, 4  ;;  %v598_v47 = vmax.f32 %v597_v37, %v1768_v43  ;;  %v616_v48 = vmax.f32 %v615_v38, %v1770_v44 }
  0xea   : > { %v1774_v49 = vpop.f32.mrf.mxu0  ;;  %v1776_v50 = vpop.f32.mrf.mxu1 }
  0xeb   : > { %v591_v51 = vmax.f32 %v589_v41, %v590_v45  ;;  %v609_v52 = vmax.f32 %v607_v42, %v608_v46  ;;  %v599_v53 = vrot.slane %v598_v47, 4  ;;  %v617_v54 = vrot.slane %v616_v48, 4 }
  0xec   : > { %v1778_v55 = vpop.f32.mrf.mxu0  ;;  %v1780_v56 = vpop.f32.mrf.mxu1 }
  0xed   : > { %v592_v57 = vrot.slane %v591_v51, 2  ;;  %v610_v58 = vrot.slane %v609_v52, 2  ;;  %v600_v59 = vmax.f32 %v598_v47, %v599_v53  ;;  %v618_v60 = vmax.f32 %v616_v48, %v617_v54 }
  0xee   : > { %v1782_v61 = vpop.f32.mrf.mxu0  ;;  %v1784_v62 = vpop.f32.mrf.mxu1 }
  0xef   : > { %v593_v63 = vmax.f32 %v591_v51, %v592_v57  ;;  %v611_v0 = vmax.f32 %v609_v52, %v610_v58  ;;  %v601_v1 = vrot.slane %v600_v59, 2  ;;  %v619_v2 = vrot.slane %v618_v60, 2 }
  0xf0   : > { %v1786_v3 = vpop.f32.mrf.mxu0  ;;  %v1788_v4 = vpop.f32.mrf.mxu1  ;;  %v623_v15 = vmax.f32 %v1774_v49, %v1782_v61  ;;  %v641_v16 = vmax.f32 %v1776_v50, %v1784_v62 }
  0xf1   : > { %v594_v5 = vrot.slane %v593_v63, 1  ;;  %v612_v6 = vrot.slane %v611_v0, 1  ;;  %v602_v7 = vmax.f32 %v600_v59, %v601_v1  ;;  %v620_v8 = vmax.f32 %v618_v60, %v619_v2 }
  0xf2   : > { %v1790_v9 = vpop.f32.mrf.mxu0  ;;  %v1792_v10 = vpop.f32.mrf.mxu1 }
  0xf3   : > { %v595_v11 = vmax.f32 %v593_v63, %v594_v5  ;;  %v613_v12 = vmax.f32 %v611_v0, %v612_v6  ;;  %v603_v13 = vrot.slane %v602_v7, 1  ;;  %v621_v14 = vrot.slane %v620_v8, 1 }
  0xf4   : > { %v1798_v17 = vpop.f32.mrf.mxu0  ;;  %v1800_v18 = vpop.f32.mrf.mxu1 }
  0xf5   : > { %v731_v25 = vsub.f32 %v1729_v19, %v595_v11  ;;  %v735_v26 = vsub.f32 %v1737_v23, %v595_v11  ;;  %v739_v29 = vsub.f32 %v1753_v31, %v595_v11  ;;  %v743_v30 = vsub.f32 %v409_v39, %v595_v11 }
  0xf6   : > { %v733_v33 = vsub.f32 %v1731_v20, %v613_v12  ;;  %v737_v34 = vsub.f32 %v1739_v24, %v613_v12  ;;  %v741_v37 = vsub.f32 %v1755_v32, %v613_v12  ;;  %v745_v38 = vsub.f32 %v1765_v40, %v613_v12  ;;  %v1809_v41 = vpop.f32.mrf.mxu0  ;;  %v1811_v42 = vpop.f32.mrf.mxu1 }
  0xf7   : > { %v795_v45 = vmul.f32 1.442695, %v731_v25  ;;  %v803_v46 = vmul.f32 1.442695, %v735_v26  ;;  %v811_v19 = vmul.f32 1.442695, %v739_v29  ;;  %v604_v47 = vmax.f32 %v602_v7, %v603_v13 }
  0xf8   : > { %v819_v23 = vmul.f32 1.442695, %v743_v30  ;;  %v622_v48 = vmax.f32 %v620_v8, %v621_v14  ;;  %v632_v31 = vmax.f32 %v1778_v55, %v1786_v3  ;;  %v650_v20 = vmax.f32 %v1780_v56, %v1788_v4  ;;  %v1817_v24 = vpop.f32.mrf.mxu0  ;;  %v1819_v32 = vpop.f32.mrf.mxu1 }
  0xf9   : > { %1453 = vpow2.f32 %v795_v45  ;;  %v799_v39 = vmul.f32 1.442695, %v733_v33  ;;  %v807_v40 = vmul.f32 1.442695, %v737_v34  ;;  %v732_v51 = vsub.f32 %v1733_v21, %v604_v47 }
  0xfa   : > { %1455 = vpow2.f32 %v803_v46  ;;  %v736_v52 = vsub.f32 %v1745_v27, %v604_v47  ;;  %v740_v53 = vsub.f32 %v1759_v35, %v604_v47  ;;  %v744_v54 = vsub.f32 %v1768_v43, %v604_v47  ;;  %v1825_v57 = vpop.f32.mrf.mxu0  ;;  %v1829_v63 = vpop.f32.mrf.mxu1 }
  0xfb   : > { %1457 = vpow2.f32 %v811_v19  ;;  %v815_v58 = vmul.f32 1.442695, %v741_v37  ;;  %v734_v59 = vsub.f32 %v1735_v22, %v622_v48  ;;  %v738_v60 = vsub.f32 %v1747_v28, %v622_v48 }
  0xfc   : > { %1459 = vpow2.f32 %v819_v23  ;;  %v823_v0 = vmul.f32 1.442695, %v745_v38  ;;  %v624_v21 = vmax.f32 %v623_v15, %v1790_v9  ;;  %v642_v27 = vmax.f32 %v641_v16, %v1792_v10  ;;  %v1833_v1 = vpop.f32.mrf.mxu0  ;;  %v1840_v11 = vpop.f32.mrf.mxu1 }
  0xfd   : > { %1461 = vpow2.f32 %v799_v39  ;;  %v797_v35 = vmul.f32 1.442695, %v732_v51  ;;  %v742_v43 = vsub.f32 %v1761_v36, %v622_v48  ;;  %v746_v2 = vsub.f32 %v1770_v44, %v622_v48 }
  0xfe   : > { %1463 = vpow2.f32 %v807_v40  ;;  %v805_v22 = vmul.f32 1.442695, %v736_v52  ;;  %v633_v28 = vmax.f32 %v632_v31, %v1798_v17  ;;  %v651_v5 = vmax.f32 %v650_v20, %v1800_v18  ;;  %v1845_v13 = vpop.f32.mrf.mxu0  ;;  %v1847_v33 = vpop.f32.mrf.mxu1 }
  0xff   : > { %1465 = vpow2.f32 %v815_v58  ;;  %v813_v6 = vmul.f32 1.442695, %v740_v53  ;;  %v821_v7 = vmul.f32 1.442695, %v744_v54  ;;  %v625_v8 = vmax.f32 %v624_v21, %v1809_v41 }
 0x100   : > { %1467 = vpow2.f32 %v823_v0  ;;  %v643_v12 = vmax.f32 %v642_v27, %v1811_v42  ;;  %v634_v36 = vmax.f32 %v633_v28, %v1817_v24  ;;  %v652_v44 = vmax.f32 %v651_v5, %v1819_v32  ;;  %v1849_v45 = vpop.f32.mrf.mxu0  ;;  %v1855_v39 = vpop.f32.mrf.mxu1 }
 0x101   : > { %1469 = vpow2.f32 %v797_v35  ;;  %v801_v14 = vmul.f32 1.442695, %v734_v59  ;;  %v626_v15 = vrot.slane %v625_v8, 4  ;;  %v809_v16 = vmul.f32 1.442695, %v738_v60 }
 0x102   : > { %1471 = vpow2.f32 %v805_v22  ;;  %v644_v25 = vrot.slane %v643_v12, 4  ;;  %v635_v26 = vrot.slane %v634_v36, 4  ;;  %v817_v29 = vmul.f32 1.442695, %v742_v43  ;;  %v1861_v54 = vpop.f32.mrf.mxu0 }
 0x103   : > { %1473 = vpow2.f32 %v813_v6  ;;  %v627_v30 = vmax.f32 %v625_v8, %v626_v15  ;;  %v653_v38 = vrot.slane %v652_v44, 4  ;;  %v825_v47 = vmul.f32 1.442695, %v746_v2  ;;  %v1870_v2 = vpop.f32.mrf.mxu1 }
 0x104   : > { %1475 = vpow2.f32 %v821_v7  ;;  %v645_v34 = vmax.f32 %v643_v12, %v644_v25  ;;  %v636_v37 = vmax.f32 %v634_v36, %v635_v26  ;;  %v1877_v8 = vpop.f32.mrf.mxu0 }
 0x105   : > { %1477 = vpow2.f32 %v801_v14  ;;  %v628_v46 = vrot.slane %v627_v30, 2  ;;  %v654_v53 = vmax.f32 %v652_v44, %v653_v38  ;;  %v1897_v38 = vpop.f32.mrf.mxu1 }
 0x106   : > { %v1851_v19 = vpop.eup %1453  ;;  %1479 = vpow2.f32 %v809_v16  ;;  %v646_v23 = vrot.slane %v645_v34, 2  ;;  %v637_v48 = vrot.slane %v636_v37, 2 }
 0x107   : > { %2521 = vst [vmem:[#allocation2_spill] sm:$0xff] %v1851_v19  ;;  %v1853_v31 = vpop.eup %1455  ;;  %v629_v20 = vmax.f32 %v627_v30, %v628_v46  ;;  %1481 = vpow2.f32 %v817_v29  ;;  %v655_v7 = vrot.slane %v654_v53, 2  ;;  %v659_v29 = vmax.f32 %v1825_v57, %v1845_v13 }
 0x108   : > { %2522 = vst [vmem:[#allocation3_spill] sm:$0xff] %v1853_v31  ;;  %v1857_v40 = vpop.eup %1457  ;;  %v923_v51 = vadd.f32 %v1853_v31, %v1851_v19  ;;  %v647_v52 = vmax.f32 %v645_v34, %v646_v23  ;;  %v638_v60 = vmax.f32 %v636_v37, %v637_v48  ;;  %1483 = vpow2.f32 %v825_v47 }
 0x109   : > { %2523 = vst [vmem:[#allocation4_spill] sm:$0xff] %v1857_v40  ;;  %v1863_v58 = vpop.eup %1459  ;;  %v630_v59 = vrot.slane %v629_v20, 1  ;;  %v677_v30 = vmax.f32 %v1829_v63, %v1847_v33  ;;  %v660_v48 = vmax.f32 %v659_v29, %v1861_v54 }
 0x10a   : > { %2524 = vst [vmem:[#allocation5_spill] sm:$0xff] %v1863_v58  ;;  %v1865_v0 = vpop.eup %1461  ;;  %v924_v21 = vadd.f32 %v1857_v40, %v923_v51  ;;  %v648_v27 = vrot.slane %v647_v52, 1  ;;  %v639_v15 = vrot.slane %v638_v60, 1 }
 0x10b   : > { %2525 = vst [vmem:[#allocation6_spill] sm:$0xff] %v1865_v0  ;;  %v1868_v35 = vpop.eup %1463  ;;  %v631_v43 = vmax.f32 %v629_v20, %v630_v59  ;;  %v1907_v20 = vpop.f32.mrf.mxu0  ;;  %v656_v59 = vmax.f32 %v654_v53, %v655_v7 }
 0x10c   : > { %2526 = vst [vmem:[#allocation7_spill] sm:$0xff] %v1868_v35  ;;  %v1872_v22 = vpop.eup %1465  ;;  %v925_v28 = vadd.f32 %v1863_v58, %v924_v21  ;;  %v941_v5 = vadd.f32 %v1868_v35, %v1865_v0  ;;  %v649_v6 = vmax.f32 %v647_v52, %v648_v27  ;;  %v640_v52 = vmax.f32 %v638_v60, %v639_v15 }
 0x10d   : > { %2527 = vst [vmem:[#allocation8_spill] sm:$0xff] %v1872_v22  ;;  %v1879_v12 = vpop.eup %1467  ;;  %v747_v36 = vsub.f32 %v1774_v49, %v631_v43  ;;  %v751_v44 = vsub.f32 %v1782_v61, %v631_v43  ;;  %v755_v14 = vsub.f32 %v1790_v9, %v631_v43  ;;  %v759_v26 = vsub.f32 %v1809_v41, %v631_v43 }
 0x10e   : > { %2528 = vst [vmem:[#allocation9_spill] sm:$0xff] %v1879_v12  ;;  %v1884_v16 = vpop.eup %1469  ;;  %v942_v25 = vadd.f32 %v1872_v22, %v941_v5  ;;  %v749_v61 = vsub.f32 %v1776_v50, %v649_v6  ;;  %v668_v9 = vmax.f32 %v1833_v1, %v1849_v45  ;;  %v753_v50 = vsub.f32 %v1784_v62, %v649_v6 }
 0x10f   : > { %2529 = vst [vmem:[#allocation10_spill] sm:$0xff] %v1884_v16  ;;  %v1892_v34 = vpop.eup %1471  ;;  %v827_v49 = vmul.f32 1.442695, %v747_v36  ;;  %v835_v37 = vmul.f32 1.442695, %v751_v44  ;;  %v678_v5 = vmax.f32 %v677_v30, %v1870_v2  ;;  %v926_v44 = vrot.slane %v925_v28, 4 }
 0x110   : > { %2530 = vst [vmem:[#allocation11_spill] sm:$0xff] %v1892_v34  ;;  %v1899_v46 = vpop.eup %1473  ;;  %v1902_v41 = vadd.f32 %v1879_v12, %v942_v25  ;;  %v932_v47 = vadd.f32 %v1892_v34, %v1884_v16  ;;  %v843_v23 = vmul.f32 1.442695, %v755_v14  ;;  %v851_v43 = vmul.f32 1.442695, %v759_v26 }
 0x111   : > { %v1909_v51 = vpop.eup %1475  ;;  %1485 = vpow2.f32 %v827_v49  ;;  %v757_v14 = vsub.f32 %v1792_v10, %v649_v6  ;;  %v831_v25 = vmul.f32 1.442695, %v749_v61  ;;  %v661_v29 = vmax.f32 %v660_v48, %v1907_v20  ;;  %v1920_v49 = vpop.f32.mrf.mxu1 }
 0x112   : > { %2531 = vst [vmem:[#allocation12_spill] sm:$0xff] %v1909_v51  ;;  %v1912_v21 = vpop.eup %1477  ;;  %v933_v27 = vadd.f32 %v1899_v46, %v932_v47  ;;  %1487 = vpow2.f32 %v835_v37  ;;  %v761_v60 = vsub.f32 %v1811_v42, %v649_v6  ;;  %v839_v15 = vmul.f32 1.442695, %v753_v50  ;;  %v1935_v6 = vpop.f32.mrf.mxu0 }
 0x113   : > { %2532 = vst [vmem:[#allocation13_spill] sm:$0xff] %v1912_v21  ;;  %v1916_v36 = vpop.eup %1479  ;;  %1489 = vpow2.f32 %v843_v23  ;;  %v748_v26 = vsub.f32 %v1778_v55, %v640_v52  ;;  %v657_v30 = vrot.slane %v656_v59, 1  ;;  %v669_v37 = vmax.f32 %v668_v9, %v1877_v8 }
 0x114   : > { %2533 = vst [vmem:[#allocation14_spill] sm:$0xff] %v1916_v36  ;;  %v934_v62 = vadd.f32 %v1909_v51, %v933_v27  ;;  %v950_v53 = vadd.f32 %v1916_v36, %v1912_v21  ;;  %v1926_v7 = vpop.eup %1481  ;;  %1491 = vpow2.f32 %v851_v43  ;;  %v679_v61 = vmax.f32 %v678_v5, %v1920_v49 }
 0x115   : > { %2534 = vst [vmem:[#allocation15_spill] sm:$0xff] %v1926_v7  ;;  %v1932_v47 = vpop.eup %1483  ;;  %1493 = vpow2.f32 %v831_v25  ;;  %v847_v48 = vmul.f32 1.442695, %v757_v14  ;;  %v752_v23 = vsub.f32 %v1786_v3, %v640_v52  ;;  %v662_v42 = vrot.slane %v661_v29, 4 }
 0x116   : > { %v951_v10 = vadd.f32 %v1926_v7, %v950_v53  ;;  %2535 = vst [vmem:[#allocation16_spill] sm:$0xff] %v1932_v47  ;;  %v927_v50 = vadd.f32 %v926_v44, %v925_v28  ;;  %v855_v27 = vmul.f32 1.442695, %v761_v60  ;;  %v756_v53 = vsub.f32 %v1798_v17, %v640_v52 }
 0x117   : > { %v935_v43 = vrot.slane %v934_v62, 4  ;;  %1495 = vpow2.f32 %v839_v15  ;;  %v829_v9 = vmul.f32 1.442695, %v748_v26  ;;  %v658_v35 = vmax.f32 %v656_v59, %v657_v30 }
 0x118   : > { %v952_v55 = vadd.f32 %v1932_v47, %v951_v10  ;;  %v760_v0 = vsub.f32 %v1817_v24, %v640_v52  ;;  %v686_v14 = vmax.f32 %v1840_v11, %v1855_v39  ;;  %v670_v3 = vmax.f32 %v669_v37, %v1935_v6 }
 0x119   : > { %1497 = vpow2.f32 %v847_v48  ;;  %v837_v25 = vmul.f32 1.442695, %v752_v23  ;;  %v750_v28 = vsub.f32 %v1780_v56, %v658_v35  ;;  %v663_v44 = vmax.f32 %v661_v29, %v662_v42 }
 0x11a   : > { %v953_v5 = vrot.slane %v952_v55, 4  ;;  %v928_v60 = vrot.slane %v927_v50, 2  ;;  %1499 = vpow2.f32 %v855_v27  ;;  %v754_v17 = vsub.f32 %v1788_v4, %v658_v35 }
 0x11b   : > { %v680_v15 = vrot.slane %v679_v61, 4  ;;  %v936_v26 = vadd.f32 %v935_v43, %v934_v62  ;;  %1501 = vpow2.f32 %v829_v9  ;;  %v845_v30 = vmul.f32 1.442695, %v756_v53  ;;  %v1956_v43 = vpop.f32.mrf.mxu1 }
 0x11c   : > { %v954_v59 = vadd.f32 %v953_v5, %v952_v55  ;;  %v853_v52 = vmul.f32 1.442695, %v760_v0  ;;  %v758_v10 = vsub.f32 %v1800_v18, %v658_v35  ;;  %v687_v37 = vmax.f32 %v686_v14, %v1897_v38  ;;  %v1959_v5 = vpop.f32.mrf.mxu0 }
 0x11d   : > { %1503 = vpow2.f32 %v837_v25  ;;  %v762_v56 = vsub.f32 %v1819_v32, %v658_v35  ;;  %v833_v29 = vmul.f32 1.442695, %v750_v28  ;;  %v664_v23 = vrot.slane %v663_v44, 2 }
 0x11e   : > { %v1945_v24 = vpop.eup %1485  ;;  %v929_v4 = vadd.f32 %v928_v60, %v927_v50  ;;  %v841_v42 = vmul.f32 1.442695, %v754_v17  ;;  %v681_v55 = vmax.f32 %v679_v61, %v680_v15  ;;  %v937_v0 = vrot.slane %v936_v26, 2 }
 0x11f   : > { %v1949_v48 = vpop.eup %1487  ;;  %v955_v53 = vrot.slane %v954_v59, 2  ;;  %1505 = vpow2.f32 %v845_v30  ;;  %v671_v18 = vrot.slane %v670_v3, 4  ;;  %v849_v32 = vmul.f32 1.442695, %v758_v10 }
 0x120   : > { %v959_v62 = vadd.f32 %v1949_v48, %v1945_v24  ;;  %v1954_v27 = vpop.eup %1489  ;;  %1507 = vpow2.f32 %v853_v52  ;;  %v665_v35 = vmax.f32 %v663_v44, %v664_v23  ;;  %v857_v14 = vmul.f32 1.442695, %v762_v56  ;;  %v1967_v52 = vpop.f32.mrf.mxu1 }
 0x121   : > { %v1961_v50 = vpop.eup %1491  ;;  %1509 = vpow2.f32 %v833_v29  ;;  %v672_v61 = vmax.f32 %v670_v3, %v671_v18  ;;  %v682_v60 = vrot.slane %v681_v55, 2  ;;  %v688_v17 = vmax.f32 %v687_v37, %v1956_v43  ;;  %v1971_v56 = vpop.f32.mrf.mxu0 }
 0x122   : > { %v960_v9 = vadd.f32 %v1954_v27, %v959_v62  ;;  %v1963_v25 = vpop.eup %1493  ;;  %1511 = vpow2.f32 %v841_v42  ;;  %v930_v15 = vrot.slane %v929_v4, 1  ;;  %v938_v30 = vadd.f32 %v937_v0, %v936_v26 }
 0x123   : > { %v956_v10 = vadd.f32 %v955_v53, %v954_v59  ;;  %1513 = vpow2.f32 %v849_v32  ;;  %v666_v29 = vrot.slane %v665_v35, 1  ;;  %v673_v62 = vrot.slane %v672_v61, 2  ;;  %v1980_v53 = vpop.f32.mrf.mxu1  ;;  %v1984_v34 = vpop.f32.mrf.mxu0 }
 0x124   : > { %v961_v28 = vadd.f32 %v1961_v50, %v960_v9  ;;  %v1969_v44 = vpop.eup %1495  ;;  %1515 = vpow2.f32 %v857_v14  ;;  %v683_v37 = vmax.f32 %v681_v55, %v682_v60  ;;  %v689_v26 = vrot.slane %v688_v17, 4 }
 0x125   : > { %v977_v3 = vadd.f32 %v1969_v44, %v1963_v25  ;;  %v939_v9 = vrot.slane %v938_v30, 1  ;;  %v931_v31 = vadd.f32 %v930_v15, %v929_v4  ;;  %v957_v19 = vrot.slane %v956_v10, 1  ;;  %v1991_v58 = vpop.f32.mrf.mxu1 }
 0x126   : > { %v962_v23 = vrot.slane %v961_v28, 4  ;;  %v1975_v42 = vpop.eup %1497  ;;  %v667_v21 = vmax.f32 %v665_v35, %v666_v29  ;;  %v674_v14 = vmax.f32 %v672_v61, %v673_v62  ;;  %v690_v16 = vmax.f32 %v688_v17, %v689_v26  ;;  %v1996_v61 = vpop.f32.mrf.mxu0 }
 0x127   : > { %v1977_v0 = vpop.eup %1499  ;;  %v978_v59 = vadd.f32 %v1975_v42, %v977_v3  ;;  %v940_v12 = vadd.f32 %v939_v9, %v938_v30  ;;  %1517 = vrcp.f32 %v931_v31  ;;  %v958_v35 = vadd.f32 %v957_v19, %v956_v10 }
 0x128   : > { %v963_v18 = vadd.f32 %v962_v23, %v961_v28  ;;  %v1982_v32 = vpop.eup %1501  ;;  %v684_v23 = vrot.slane %v683_v37, 1  ;;  %v763_v29 = vsub.f32 %v1825_v57, %v667_v21  ;;  %v767_v30 = vsub.f32 %v1845_v13, %v667_v21 }
 0x129   : > { %v979_v28 = vadd.f32 %v1977_v0, %v978_v59  ;;  %v771_v59 = vsub.f32 %v1861_v54, %v667_v21  ;;  %v691_v19 = vrot.slane %v690_v16, 2  ;;  %1519 = vrcp.f32 %v940_v12  ;;  %v2015_v54 = vpop.f32.mrf.mxu0 }
 0x12a   : > { %v964_v36 = vrot.slane %v963_v18, 2  ;;  %v1987_v55 = vpop.eup %1503  ;;  %v2005_v31 = vmax.f32 %v683_v37, %v684_v23  ;;  %v867_v47 = vmul.f32 1.442695, %v767_v30 }
 0x12b   : > { %v980_v3 = vrot.slane %v979_v28, 4  ;;  %v968_v22 = vadd.f32 %v1987_v55, %v1982_v32 }
 0x12c   : > { %v965_v60 = vadd.f32 %v964_v36, %v963_v18  ;;  %v1993_v4 = vpop.eup %1505  ;;  %v675_v18 = vrot.slane %v674_v14, 1 }
 0x12d   : > { %v1998_v62 = vpop.eup %1507  ;;  %v981_v36 = vadd.f32 %v980_v3, %v979_v28  ;;  %v969_v17 = vadd.f32 %v1993_v4, %v968_v22  ;;  %v775_v28 = vsub.f32 %v1907_v20, %v667_v21  ;;  %v2011_v22 = vpop.f32.mrf.mxu1  ;;  %v859_v3 = vmul.f32 1.442695, %v763_v29  ;;  %v1180_v20 = vld [vmem:[%s2473_s3] sm:$0xf] }
 0x12e   : > { %v966_v15 = vrot.slane %v965_v60, 1  ;;  %v2002_v26 = vpop.eup %1509  ;;  %1183 = vperm.xlu0 %1442, %v1180_v20  }
 0x12f   : > { %v2007_v10 = vpop.eup %1511  ;;  %v982_v57 = vrot.slane %v981_v36, 2  ;;  %v970_v40 = vadd.f32 %v1998_v62, %v969_v17  ;;  %v875_v17 = vmul.f32 1.442695, %v771_v59 }
 0x130   : > { %v967_v9 = vadd.f32 %v966_v15, %v965_v60  ;;  %v986_v13 = vadd.f32 %v2007_v10, %v2002_v26  ;;  %v676_v60 = vmax.f32 %v674_v14, %v675_v18  ;;  %v692_v15 = vmax.f32 %v690_v16, %v691_v19  ;;  %v2017_v37 = vpop.eup %1513  ;;  %v2027_v19 = vpop.f32.mrf.mxu1 }
 0x131   : > { %v983_v23 = vadd.f32 %v982_v57, %v981_v36  ;;  %v971_v12 = vrot.slane %v970_v40, 4  ;;  %v765_v14 = vsub.f32 %v1829_v63, %v2005_v31  ;;  %v2025_v16 = vpop.eup %1515  ;;  %v2033_v57 = vpop.f32.mrf.mxu0 }
 0x132   : > { %1521 = vrcp.f32 %v967_v9  ;;  %v987_v21 = vadd.f32 %v2017_v37, %v986_v13  ;;  %v883_v9 = vmul.f32 1.442695, %v775_v28  ;;  %v693_v36 = vrot.slane %v692_v15, 1 }
 0x133   : > { %1523 = vrcp.f32 %v958_v35  ;;  %v984_v29 = vrot.slane %v983_v23, 1  ;;  %v972_v18 = vadd.f32 %v971_v12, %v970_v40  ;;  %v769_v35 = vsub.f32 %v1847_v33, %v2005_v31  ;;  %v2040_v33 = vpop.f32.mrf.mxu1 }
 0x134   : > { %v988_v30 = vadd.f32 %v2025_v16, %v987_v21  ;;  %1525 = vpow2.f32 %v859_v3  ;;  %v764_v59 = vsub.f32 %v1833_v1, %v676_v60  ;;  %v768_v20 = vsub.f32 %v1849_v45, %v676_v60  ;;  %v2045_v45 = vpop.eup %1517 }
 0x135   : > { %v985_v63 = vadd.f32 %v984_v29, %v983_v23  ;;  %v973_v13 = vrot.slane %v972_v18, 2  ;;  %1527 = vpow2.f32 %v867_v47  ;;  %v863_v28 = vmul.f32 1.442695, %v765_v14  ;;  %v2043_v47 = vpop.f32.mrf.mxu0  ;;  %2536 = vst [vmem:[#allocation17_spill] sm:$0xff] %v2045_v45 }
 0x136   : > { %v989_v40 = vrot.slane %v988_v30, 4  ;;  %1529 = vpow2.f32 %v875_v17  ;;  %v2036_v12 = vmax.f32 %v692_v15, %v693_v36  ;;  %v772_v3 = vsub.f32 %v1877_v8, %v676_v60 }
 0x137   : > { %1531 = vrcp.f32 %v985_v63  ;;  %v974_v1 = vadd.f32 %v973_v13, %v972_v18  ;;  %v776_v23 = vsub.f32 %v1935_v6, %v676_v60  ;;  %v861_v29 = vmul.f32 1.442695, %v764_v59  ;;  %v2060_v59 = vpop.eup %1519 }
 0x138   : > { %v990_v7 = vadd.f32 %v989_v40, %v988_v30  ;;  %1533 = vpow2.f32 %v883_v9  ;;  %v773_v15 = vsub.f32 %v1870_v2, %v2005_v31  ;;  %v869_v17 = vmul.f32 1.442695, %v768_v20  ;;  %v2058_v2 = vpop.f32.mrf.mxu1  ;;  %2537 = vst [vmem:[#allocation18_spill] sm:$0xff] %v2060_v59  ;;  %v2062_v20 = vpop.f32.mrf.mxu0 }
 0x139   : > { %v695_v14 = vmax.f32 %v1959_v5, %v1984_v34  ;;  %1535 = vpow2.f32 %v863_v28  ;;  %v871_v36 = vmul.f32 1.442695, %v769_v35  ;;  %v766_v18 = vsub.f32 %v1840_v11, %v2036_v12 }
 0x13a   : > { %v991_v8 = vrot.slane %v990_v7, 2  ;;  %v877_v6 = vmul.f32 1.442695, %v772_v3  ;;  %v713_v60 = vmax.f32 %v1967_v52, %v1991_v58  ;;  %v704_v9 = vmax.f32 %v1971_v56, %v1996_v61 }
 0x13b   : > { %v696_v30 = vmax.f32 %v695_v14, %v2015_v54  ;;  %v975_v63 = vrot.slane %v974_v1, 1  ;;  %1537 = vpow2.f32 %v861_v29  ;;  %v885_v35 = vmul.f32 1.442695, %v776_v23 }
 0x13c   : > { %v992_v13 = vadd.f32 %v991_v8, %v990_v7  ;;  %1539 = vpow2.f32 %v869_v17  ;;  %v714_v11 = vmax.f32 %v713_v60, %v2027_v19  ;;  %v705_v40 = vmax.f32 %v704_v9, %v2033_v57  ;;  %v2075_v8 = vpop.f32.mrf.mxu1 }
 0x13d   : > { %v697_v28 = vmax.f32 %v696_v30, %v2043_v47  ;;  %1541 = vpow2.f32 %v871_v36  ;;  %v865_v21 = vmul.f32 1.442695, %v766_v18  ;;  %v722_v45 = vmax.f32 %v1980_v53, %v2011_v22 }
 0x13e   : > { %v993_v14 = vrot.slane %v992_v13, 1  ;;  %1543 = vpow2.f32 %v877_v6  ;;  %v715_v29 = vmax.f32 %v714_v11, %v2058_v2  ;;  %v706_v17 = vmax.f32 %v705_v40, %v2062_v20 }
 0x13f   : > { %v2067_v3 = vpop.eup %1521  ;;  %v698_v23 = vrot.slane %v697_v28, 4  ;;  %v976_v60 = vadd.f32 %v975_v63, %v974_v1  ;;  %1545 = vpow2.f32 %v885_v35  ;;  %v770_v9 = vsub.f32 %v1855_v39, %v2036_v12 }
 0x140   : > { %v2071_v7 = vpop.eup %1523  ;;  %v723_v36 = vmax.f32 %v722_v45, %v2040_v33  ;;  %v716_v51 = vrot.slane %v715_v29, 4  ;;  %v2084_v6 = vmul.f32 %v2067_v3, %v1954_v27  ;;  %v994_v40 = vadd.f32 %v993_v14, %v992_v13 }
 0x141   : > { %2538 = vst [vmem:[#allocation19_spill] sm:$0xff] %v2071_v7  ;;  %v2080_v18 = vpop.eup %1525  ;;  %v699_v30 = vmax.f32 %v697_v28, %v698_v23  ;;  %v707_v7 = vrot.slane %v706_v17, 4  ;;  %v777_v1 = vsub.f32 %v1920_v49, %v2005_v31  ;;  %1547 = vpow2.f32 %v865_v21 }
 0x142   : > { %2539 = vst [vmem:[#allocation20_spill] sm:$0xff] %v2084_v6  ;;  %v2086_v11 = vpop.eup %1527  ;;  %v724_v39 = vmax.f32 %v723_v36, %v2075_v8  ;;  %v717_v35 = vmax.f32 %v715_v29, %v716_v51  ;;  %v2095_v23 = vmul.f32 %v2067_v3, %v1961_v50  ;;  %1549 = vrcp.f32 %v976_v60 }
 0x143   : > { %v2091_v63 = vpop.eup %1529  ;;  %v700_v45 = vrot.slane %v699_v30, 2  ;;  %v708_v28 = vmax.f32 %v706_v17, %v707_v7  ;;  %v879_v59 = vmul.f32 1.442695, %v773_v15  ;;  %v774_v13 = vsub.f32 %v1897_v38, %v2036_v12 }
 0x144   : > { %2540 = vst [vmem:[#allocation21_spill] sm:$0xff] %v2095_v23  ;;  %v2097_v27 = vpop.eup %1531  ;;  %v873_v49 = vmul.f32 1.442695, %v770_v9  ;;  %v718_v21 = vrot.slane %v717_v35, 2  ;;  %1551 = vrcp.f32 %v994_v40  ;;  %v887_v7 = vmul.f32 1.442695, %v777_v1 }
 0x145   : > { %v701_v31 = vmax.f32 %v699_v30, %v700_v45  ;;  %v709_v14 = vrot.slane %v708_v28, 2  ;;  %v2103_v51 = vpop.eup %1533  ;;  %v778_v50 = vsub.f32 %v1956_v43, %v2036_v12  ;;  %v725_v29 = vrot.slane %v724_v39, 4 }
 0x146   : > { %v2107_v17 = vpop.eup %1535  ;;  %v719_v60 = vmax.f32 %v717_v35, %v718_v21  ;;  %v2111_v9 = vmul.f32 %v2097_v27, %v1975_v42  ;;  %v2542_v30 = vrot.slane %v1902_v41, 4  ;;  %1553 = vpow2.f32 %v873_v49 }
 0x147   : > { %v702_v15 = vrot.slane %v701_v31, 1  ;;  %v710_v38 = vmax.f32 %v708_v28, %v709_v14  ;;  %v881_v40 = vmul.f32 1.442695, %v774_v13  ;;  %1555 = vpow2.f32 %v879_v59 }
 0x148   : > { %2541 = vst [vmem:[#allocation22_spill] sm:$0xff] %v2111_v9  ;;  %v945_v45 = vadd.f32 %v2542_v30, %v1902_v41  ;;  %v2116_v1 = vpop.eup %1537  ;;  %v720_v12 = vrot.slane %v719_v60, 1  ;;  %v2120_v36 = vmul.f32 %v2097_v27, %v1977_v0  ;;  %1557 = vpow2.f32 %v887_v7  ;;  %v2565_v9 = vld [vmem:[#allocation4_spill] sm:$0xff] }
 0x149   : > { %v703_v43 = vmax.f32 %v701_v31, %v702_v15  ;;  %v2122_v35 = vpop.eup %1539  ;;  %v889_v42 = vmul.f32 1.442695, %v778_v50  ;;  %v711_v28 = vrot.slane %v710_v38, 1  ;;  %v726_v21 = vmax.f32 %v724_v39, %v725_v29 }
 0x14a   : > { %2543 = vst [vmem:[#allocation23_spill] sm:$0xff] %v2120_v36  ;;  %v2124_v14 = vpop.eup %1541  ;;  %v946_v0 = vrot.slane %v945_v45, 2  ;;  %v995_v15 = vadd.f32 %v2086_v11, %v2080_v18  ;;  %1559 = vpow2.f32 %v881_v40  ;;  %v721_v7 = vmax.f32 %v719_v60, %v720_v12  ;;  %v2566_v36 = vld [vmem:[#allocation17_spill] sm:$0xff] }
 0x14b   : > { %v779_v41 = vsub.f32 %v1959_v5, %v703_v43  ;;  %v783_v13 = vsub.f32 %v1984_v34, %v703_v43  ;;  %v787_v59 = vsub.f32 %v2015_v54, %v703_v43  ;;  %v791_v49 = vsub.f32 %v2043_v47, %v703_v43  ;;  %v2130_v31 = vpop.eup %1543 }
 0x14c   : > { %v2134_v50 = vpop.eup %1545  ;;  %v1004_v39 = vadd.f32 %v2122_v35, %v2116_v1  ;;  %1561 = vpow2.f32 %v889_v42  ;;  %v712_v30 = vmax.f32 %v710_v38, %v711_v28  ;;  %v727_v47 = vrot.slane %v726_v21, 2 }
 0x14d   : > { %v891_v5 = vmul.f32 1.442695, %v779_v41  ;;  %v899_v29 = vmul.f32 1.442695, %v783_v13  ;;  %v907_v34 = vmul.f32 1.442695, %v787_v59  ;;  %v781_v6 = vsub.f32 %v1967_v52, %v721_v7 }
 0x14e   : > { %v915_v54 = vmul.f32 1.442695, %v791_v49  ;;  %v2138_v43 = vpop.eup %1547  ;;  %v785_v40 = vsub.f32 %v1991_v58, %v721_v7  ;;  %v789_v60 = vsub.f32 %v2027_v19, %v721_v7  ;;  %v947_v12 = vadd.f32 %v946_v0, %v945_v45 }
 0x14f   : > { %1563 = vpow2.f32 %v891_v5  ;;  %v996_v23 = vadd.f32 %v2091_v63, %v995_v15  ;;  %v793_v41 = vsub.f32 %v2058_v2, %v721_v7  ;;  %v2145_v13 = vpop.eup %1549  ;;  %v1005_v38 = vadd.f32 %v2130_v31, %v1004_v39 }
 0x150   : > { %1565 = vpow2.f32 %v899_v29  ;;  %v895_v42 = vmul.f32 1.442695, %v781_v6  ;;  %v903_v28 = vmul.f32 1.442695, %v785_v40  ;;  %v911_v59 = vmul.f32 1.442695, %v789_v60 }
 0x151   : > { %1567 = vpow2.f32 %v907_v34  ;;  %v919_v52 = vmul.f32 1.442695, %v793_v41  ;;  %v728_v49 = vmax.f32 %v726_v21, %v727_v47  ;;  %v2148_v58 = vpop.eup %1551  ;;  %v780_v19 = vsub.f32 %v1971_v56, %v712_v30 }
 0x152   : > { %1569 = vpow2.f32 %v915_v54  ;;  %v784_v45 = vsub.f32 %v1996_v61, %v712_v30  ;;  %v788_v2 = vsub.f32 %v2033_v57, %v712_v30  ;;  %v948_v0 = vrot.slane %v947_v12, 1 }
 0x153   : > { %1571 = vpow2.f32 %v895_v42  ;;  %v997_v15 = vadd.f32 %v2103_v51, %v996_v23  ;;  %v2154_v7 = vpop.eup %1553  ;;  %v1013_v6 = vadd.f32 %v2124_v14, %v2107_v17  ;;  %v792_v21 = vsub.f32 %v2062_v20, %v712_v30 }
 0x154   : > { %1573 = vpow2.f32 %v903_v28  ;;  %v893_v39 = vmul.f32 1.442695, %v780_v19  ;;  %v901_v5 = vmul.f32 1.442695, %v784_v45  ;;  %v2159_v29 = vpop.eup %1555  ;;  %v1006_v56 = vadd.f32 %v2134_v50, %v1005_v38 }
 0x155   : > { %1575 = vpow2.f32 %v911_v59  ;;  %v909_v61 = vmul.f32 1.442695, %v788_v2  ;;  %v729_v57 = vrot.slane %v728_v49, 1  ;;  %v2162_v34 = vpop.eup %1557  ;;  %v2166_v23 = vmul.f32 %v2145_v13, %v1993_v4 }
 0x156   : > { %1577 = vpow2.f32 %v919_v52  ;;  %v2170_v54 = vmul.f32 %v2145_v13, %v1998_v62  ;;  %v2174_v20 = vmul.f32 %v2148_v58, %v2017_v37  ;;  %v949_v30 = vadd.f32 %v948_v0, %v947_v12 }
 0x157   : > { %2544 = vst [vmem:[#allocation24_spill] sm:$0xff] %v2166_v23  ;;  %v1022_v47 = vadd.f32 %v2154_v7, %v2138_v43  ;;  %1579 = vpow2.f32 %v893_v39  ;;  %v730_v40 = vmax.f32 %v728_v49, %v729_v57  ;;  %v2178_v60 = vpop.eup %1559  ;;  %v917_v41 = vmul.f32 1.442695, %v792_v21 }
 0x158   : > { %2545 = vst [vmem:[#allocation25_spill] sm:$0xff] %v2170_v54  ;;  %2546 = vst [vmem:[#allocation26_spill] sm:$0xff] %v2174_v20  ;;  %1581 = vpow2.f32 %v901_v5  ;;  %v998_v4 = vrot.slane %v997_v15, 4  ;;  %v1014_v38 = vadd.f32 %v2159_v29, %v1013_v6  ;;  %v1007_v37 = vrot.slane %v1006_v56, 4 }
 0x159   : > { %v782_v62 = vsub.f32 %v1980_v53, %v730_v40  ;;  %v786_v42 = vsub.f32 %v2011_v22, %v730_v40  ;;  %v2183_v28 = vpop.eup %1561  ;;  %1583 = vpow2.f32 %v909_v61  ;;  %v790_v12 = vsub.f32 %v2040_v33, %v730_v40 }
 0x15a   : > { %v794_v59 = vsub.f32 %v2075_v8, %v730_v40  ;;  %1585 = vrcp.f32 %v949_v30  ;;  %v1023_v49 = vadd.f32 %v2178_v60, %v1022_v47  ;;  %v2194_v6 = vadd.f32 %v998_v4, %v997_v15  ;;  %v2558_v47 = vld [vmem:[#allocation12_spill] sm:$0xff] }
 0x15b   : > { %v897_v19 = vmul.f32 1.442695, %v782_v62  ;;  %v905_v45 = vmul.f32 1.442695, %v786_v42  ;;  %1587 = vpow2.f32 %v917_v41  ;;  %v913_v53 = vmul.f32 1.442695, %v790_v12 }
 0x15c   : > { %v2187_v52 = vpop.eup %1563  ;;  %v921_v22 = vmul.f32 1.442695, %v794_v59  ;;  %v2197_v33 = vadd.f32 %v2162_v34, %v1014_v38  ;;  %v1008_v39 = vadd.f32 %v1007_v37, %v1006_v56  ;;  %v2207_v61 = vmul.f32 %v2148_v58, %v2025_v16 }
 0x15d   : > { %v2190_v2 = vpop.eup %1565  ;;  %1589 = vpow2.f32 %v897_v19  ;;  %v1024_v57 = vadd.f32 %v2183_v28, %v1023_v49  ;;  %v2221_v16 = vmul.f32 %v2145_v13, %v1982_v32  ;;  %v2225_v41 = vmul.f32 %v2145_v13, %v1987_v55 }
 0x15e   : > { %v2192_v0 = vpop.eup %1567  ;;  %v1031_v8 = vadd.f32 %v2190_v2, %v2187_v52  ;;  %1591 = vpow2.f32 %v905_v45  ;;  %2547 = vst [vmem:[#allocation27_spill] sm:$0xff] %v2207_v61  ;;  %v2232_v62 = vmul.f32 %v2148_v58, %v2002_v26  ;;  %v2236_v42 = vmul.f32 %v2148_v58, %v2007_v10 }
 0x15f   : > { %v2201_v21 = vpop.eup %1569  ;;  %1593 = vpow2.f32 %v913_v53  ;;  %2548 = vst [vmem:[#allocation28_spill] sm:$0xff] %v2221_v16  ;;  %2549 = vst [vmem:[#allocation29_spill] sm:$0xff] %v2225_v41  ;;  %v2244_v55 = vmul.f32 %v2067_v3, %v1945_v24  ;;  %v2248_v13 = vmul.f32 %v2067_v3, %v1949_v48  ;;  %v2252_v26 = vmul.f32 %v2097_v27, %v1963_v25 }
 0x160   : > { %v2209_v15 = vpop.eup %1571  ;;  %v1032_v30 = vadd.f32 %v2192_v0, %v1031_v8  ;;  %1595 = vpow2.f32 %v921_v22  ;;  %2550 = vst [vmem:[#allocation30_spill] sm:$0xff] %v2232_v62  ;;  %2551 = vst [vmem:[#allocation31_spill] sm:$0xff] %v2236_v42  ;;  %v1000_v49 = vrot.slane %v2194_v6, 2  ;;  %v1016_v24 = vrot.slane %v2197_v33, 4  ;;  %v2563_v42 = vld [vmem:[#allocation16_spill] sm:$0xff] }
 0x161   : > { %v2215_v40 = vpop.eup %1573  ;;  %2552 = vst [vmem:[#allocation32_spill] sm:$0xff] %v2244_v55  ;;  %2553 = vst [vmem:[#allocation33_spill] sm:$0xff] %v2248_v13  ;;  %v1009_v25 = vrot.slane %v1008_v39, 2  ;;  %v2270_v22 = vmul.f32 %v2097_v27, %v1969_v44  ;;  %v1025_v8 = vrot.slane %v1024_v57, 4  ;;  %v2560_v27 = vld [vmem:[#allocation15_spill] sm:$0xff]  ;;  %v2299_v55 = vmul.f32 %v2566_v36, %v2565_v9  ;;  %v2568_v9 = vld [vmem:[#allocation5_spill] sm:$0xff] }
 0x162   : > { %v1033_v4 = vadd.f32 %v2201_v21, %v1032_v30  ;;  %v1049_v38 = vadd.f32 %v2215_v40, %v2209_v15  ;;  %v2238_v37 = vpop.eup %1575  ;;  %2554 = vst [vmem:[#allocation34_spill] sm:$0xff] %v2252_v26  ;;  %v2313_v61 = vmul.f32 %v2566_v36, %v2568_v9 }
 0x163   : > { %v2254_v12 = vpop.eup %1577  ;;  %2555 = vst [vmem:[#allocation35_spill] sm:$0xff] %v2270_v22  ;;  %2567 = vst [vmem:[#allocation16_spill] sm:$0xff] %v2299_v55  ;;  %v1010_v44 = vadd.f32 %v1009_v25, %v1008_v39  ;;  %v1017_v25 = vadd.f32 %v1016_v24, %v2197_v33  ;;  %v2574_v24 = vld [vmem:[#allocation10_spill] sm:$0xff] }
 0x164   : > { %v1034_v10 = vrot.slane %v1033_v4, 4  ;;  %v1050_v58 = vadd.f32 %v2238_v37, %v1049_v38  ;;  %v2257_v59 = vpop.eup %1579  ;;  %v2556_v38 = vld [vmem:[#allocation18_spill] sm:$0xff]  ;;  %2569 = vst [vmem:[#allocation4_spill] sm:$0xff] %v2313_v61 }
 0x165   : > { %v2265_v3 = vpop.eup %1581  ;;  %v2276_v19 = vmul.f32 %v2556_v38, %v1899_v46  ;;  %v2280_v48 = vmul.f32 %v2556_v38, %v2558_v47 }
 0x166   : > { %v1035_v45 = vadd.f32 %v1034_v10, %v1033_v4  ;;  %v1051_v53 = vadd.f32 %v2254_v12, %v1050_v58  ;;  %v1040_v30 = vadd.f32 %v2265_v3, %v2257_v59  ;;  %v2282_v56 = vpop.eup %1583  ;;  %v2561_v58 = vld [vmem:[#allocation19_spill] sm:$0xff] }
 0x167   : > { %2557 = vst [vmem:[#allocation18_spill] sm:$0xff] %v2276_v19  ;;  %2559 = vst [vmem:[#allocation12_spill] sm:$0xff] %v2280_v48  ;;  %v2288_v32 = vmul.f32 %v2561_v58, %v2560_v27  ;;  %v1586_v5 = vpop.eup %1585  ;;  %v2295_v47 = vmul.f32 %v2561_v58, %v2563_v42  ;;  %v1001_v42 = vadd.f32 %v1000_v49, %v2194_v6  ;;  %v1011_v6 = vrot.slane %v1010_v44, 1  ;;  %v2578_v49 = vld [vmem:[#allocation13_spill] sm:$0xff] }
 0x168   : > { %v1036_v4 = vrot.slane %v1035_v45, 2  ;;  %v1052_v10 = vrot.slane %v1051_v53, 4  ;;  %v1041_v62 = vadd.f32 %v2282_v56, %v1040_v30  ;;  %v2301_v13 = vpop.eup %1587  ;;  %v1026_v48 = vadd.f32 %v1025_v8, %v1024_v57  ;;  %v2572_v8 = vld [vmem:[#allocation9_spill] sm:$0xff] }
 0x169   : > { %2562 = vst [vmem:[#allocation15_spill] sm:$0xff] %v2288_v32  ;;  %2564 = vst [vmem:[#allocation19_spill] sm:$0xff] %v2295_v47  ;;  %v2328_v9 = vmul.f32 %v1586_v5, %v2572_v8  ;;  %v2333_v32 = vmul.f32 %v2556_v38, %v2574_v24  ;;  %v2576_v47 = vld [vmem:[#allocation11_spill] sm:$0xff]  ;;  %v2343_v8 = vmul.f32 %v2561_v58, %v2578_v49  ;;  %v2580_v24 = vld [vmem:[#allocation14_spill] sm:$0xff] }
 0x16a   : > { %v1037_v26 = vadd.f32 %v1036_v4, %v1035_v45  ;;  %v1053_v27 = vadd.f32 %v1052_v10, %v1051_v53  ;;  %v2303_v22 = vpop.eup %1589  ;;  %v1042_v30 = vadd.f32 %v2301_v13, %v1041_v62  ;;  %v2570_v53 = vld [vmem:[#allocation8_spill] sm:$0xff]  ;;  %v1027_v16 = vrot.slane %v1026_v48, 2  ;;  %v2584_v49 = vld [vmem:[#allocation6_spill] sm:$0xff] }
 0x16b   : > { %v2308_v19 = vpop.eup %1591  ;;  %v2321_v4 = vmul.f32 %v1586_v5, %v2570_v53  ;;  %2573 = vst [vmem:[#allocation5_spill] sm:$0xff] %v2328_v9  ;;  %2575 = vst [vmem:[#allocation8_spill] sm:$0xff] %v2333_v32  ;;  %v2337_v53 = vmul.f32 %v2556_v38, %v2576_v47  ;;  %v2350_v55 = vmul.f32 %v2561_v58, %v2580_v24  ;;  %v2582_v47 = vld [vmem:[#allocation2_spill] sm:$0xff]  ;;  %v2585_v32 = vld [vmem:[#allocation7_spill] sm:$0xff] }
 0x16c   : > { %v1054_v20 = vrot.slane %v1053_v27, 2  ;;  %v2315_v39 = vpop.eup %1593  ;;  %v1043_v45 = vrot.slane %v1042_v30, 4  ;;  %v1058_v62 = vadd.f32 %v2308_v19, %v2303_v22  ;;  %v1038_v57 = vrot.slane %v1037_v26, 1  ;;  %2579 = vst [vmem:[#allocation10_spill] sm:$0xff] %v2343_v8 }
 0x16d   : > { %2571 = vst [vmem:[#allocation17_spill] sm:$0xff] %v2321_v4  ;;  %v2323_v10 = vpop.eup %1595  ;;  %2577 = vst [vmem:[#allocation9_spill] sm:$0xff] %v2337_v53  ;;  %v2361_v4 = vmul.f32 %v1586_v5, %v2584_v49  ;;  %v2366_v58 = vmul.f32 %v1586_v5, %v2585_v32  ;;  %v1002_v49 = vrot.slane %v1001_v42, 1 }
 0x16e   : > { %v1044_v46 = vadd.f32 %v1043_v45, %v1042_v30  ;;  %v1059_v33 = vadd.f32 %v2315_v39, %v1058_v62  ;;  %v1055_v41 = vadd.f32 %v1054_v20, %v1053_v27  ;;  %2581 = vst [vmem:[#allocation11_spill] sm:$0xff] %v2350_v55  ;;  %v1039_v38 = vadd.f32 %v1038_v57, %v1037_v26  ;;  %v2583_v27 = vld [vmem:[#allocation3_spill] sm:$0xff] }
 0x16f   : > { %v2354_v20 = vmul.f32 %v2566_v36, %v2582_v47  ;;  %v2358_v23 = vmul.f32 %v2566_v36, %v2583_v27  ;;  %v1018_v26 = vrot.slane %v1017_v25, 2  ;;  %v1028_v47 = vadd.f32 %v1027_v16, %v1026_v48 }
 0x170   : > { %v1045_v30 = vrot.slane %v1044_v46, 2  ;;  %v1060_v45 = vadd.f32 %v2323_v10, %v1059_v33  ;;  %v1056_v57 = vrot.slane %v1055_v41, 1  ;;  %v1149_v27 = vpack.c.bf16 %v2366_v58, %v2361_v4 }
 0x171   : > { %1597 = vrcp.f32 %v1039_v38  ;;  %v1019_v62 = vadd.f32 %v1018_v26, %v1017_v25  ;;  %v1029_v5 = vrot.slane %v1028_v47, 1  ;;  %v1003_v55 = vadd.f32 %v1002_v49, %v1001_v42 }
 0x172   : > { %v1046_v33 = vadd.f32 %v1045_v30, %v1044_v46  ;;  %v1061_v9 = vrot.slane %v1060_v45, 4  ;;  %v1012_v46 = vadd.f32 %v1011_v6, %v1010_v44  ;;  %v1057_v8 = vadd.f32 %v1056_v57, %v1055_v41 }
 0x173   : > { %v1020_v24 = vrot.slane %v1019_v62, 1  ;;  %v1030_v16 = vadd.f32 %v1029_v5, %v1028_v47 }
 0x174   : > { %v1047_v53 = vrot.slane %v1046_v33, 1  ;;  %v1062_v36 = vadd.f32 %v1061_v9, %v1060_v45 }
 0x175   : > { %v1021_v9 = vadd.f32 %v1020_v24, %v1019_v62 }
 0x176   : > { %v1048_v30 = vadd.f32 %v1047_v53, %v1046_v33  ;;  %v1063_v61 = vrot.slane %v1062_v36, 2 }
 0x178   : > { %1599 = vrcp.f32 %v1048_v30  ;;  %v1064_v32 = vadd.f32 %v1063_v61, %v1062_v36 }
 0x179   : > { %1601 = vrcp.f32 %v1012_v46 }
 0x17a   : > { %v1065_v54 = vrot.slane %v1064_v32, 1  ;;  %1603 = vrcp.f32 %v1057_v8 }
 0x17b   : > { %1605 = vrcp.f32 %v1003_v55 }
 0x17c   : > { %v1066_v48 = vadd.f32 %v1065_v54, %v1064_v32 }
 0x17e   : > { %1607 = vrcp.f32 %v1066_v48  ;;  %v1598_v45 = vpop.eup %1597 }
 0x17f   : > { %1609 = vrcp.f32 %v1030_v16  ;;  %v1139_v25 = vmul.f32 %v1598_v45, %v2192_v0  ;;  %v1143_v41 = vmul.f32 %v1598_v45, %v2201_v21  ;;  %v1131_v38 = vmul.f32 %v1598_v45, %v2187_v52 }
 0x180   : > { %1611 = vrcp.f32 %v1021_v9  ;;  %v1135_v33 = vmul.f32 %v1598_v45, %v2190_v2 }
 0x181   : > { %v1175_v62 = vpack.c.bf16 %v1143_v41, %v1139_v25  ;;  %v2587_v25 = vld [vmem:[#allocation24_spill] sm:$0xff]  ;;  %v2589_v41 = vld [vmem:[#allocation21_spill] sm:$0xff] }
 0x182   : > { %v1171_v36 = vpack.c.bf16 %v1135_v33, %v1131_v38  ;;  %v2601_v38 = vld [vmem:[#allocation12_spill] sm:$0xff]  ;;  %v2602_v33 = vld [vmem:[#allocation18_spill] sm:$0xff] }
 0x185   : > { %v1600_v44 = vpop.eup %1599 }
 0x186   : > { %v1140_v61 = vmul.f32 %v1600_v44, %v2282_v56  ;;  %v1144_v42 = vmul.f32 %v1600_v44, %v2301_v13  ;;  %v1132_v6 = vmul.f32 %v1600_v44, %v2257_v59  ;;  %v1136_v53 = vmul.f32 %v1600_v44, %v2265_v3  ;;  %v1602_v54 = vpop.eup %1601 }
 0x187   : > { %v1604_v55 = vpop.eup %1603  ;;  %v1124_v21 = vmul.f32 %v1602_v54, %v2130_v31  ;;  %v1128_v56 = vmul.f32 %v1602_v54, %v2134_v50 }
 0x188   : > { %v1176_v8 = vpack.c.bf16 %v1144_v42, %v1140_v61  ;;  %v1606_v26 = vpop.eup %1605  ;;  %v1172_v0 = vpack.c.bf16 %v1136_v53, %v1132_v6  ;;  %v1141_v59 = vmul.f32 %v1604_v55, %v2238_v37  ;;  %v1145_v3 = vmul.f32 %v1604_v55, %v2254_v12  ;;  %v2592_v42 = vld [vmem:[#allocation29_spill] sm:$0xff]  ;;  %v2593_v6 = vld [vmem:[#allocation28_spill] sm:$0xff] }
 0x189   : > { %v1123_v31 = vmul.f32 %v1606_v26, %v2091_v63  ;;  %v1127_v50 = vmul.f32 %v1606_v26, %v2103_v51  ;;  %v1168_v46 = vpack.c.bf16 %v1128_v56, %v1124_v21  ;;  %v1116_v37 = vmul.f32 %v1602_v54, %v2116_v1  ;;  %v2605_v21 = vld [vmem:[#allocation22_spill] sm:$0xff] }
 0x18a   : > { %1186 = vmatprep.subr.bf16.mxu0 %v1176_v8  ;;  %v1120_v12 = vmul.f32 %v1602_v54, %v2122_v35  ;;  %v1115_v1 = vmul.f32 %v1606_v26, %v2080_v18  ;;  %v1119_v35 = vmul.f32 %v1606_v26, %v2086_v11  ;;  %v2594_v53 = vpack.c.bf16 %v2592_v42, %v2593_v6  ;;  %v2596_v54 = vld [vmem:[#allocation26_spill] sm:$0xff]  ;;  %v2599_v8 = vld [vmem:[#allocation32_spill] sm:$0xff] }
 0x18b   : > { %v1608_v13 = vpop.eup %1607  ;;  %1187 = vmatpush1.bf16.msra.mxu0 %v1175_v62  ;;  %v1167_v5 = vpack.c.bf16 %v1127_v50, %v1123_v31  ;;  %v2603_v26 = vpack.c.bf16 %v2601_v38, %v2602_v33  ;;  %v2616_v31 = vld [vmem:[#allocation35_spill] sm:$0xff]  ;;  %v2617_v50 = vld [vmem:[#allocation34_spill] sm:$0xff] }
 0x18c   : > { %v1142_v57 = vmul.f32 %v1608_v13, %v2315_v39  ;;  %v1146_v24 = vmul.f32 %v1608_v13, %v2323_v10  ;;  %1188 = vmatprep.subr.bf16.mxu0 %v1172_v0  ;;  %v1134_v52 = vmul.f32 %v1608_v13, %v2303_v22  ;;  %v1138_v2 = vmul.f32 %v1608_v13, %v2308_v19  ;;  %v1610_v47 = vpop.eup %1609  ;;  %v2604_v0 = vld [vmem:[#allocation23_spill] sm:$0xff] }
 0x18d   : > { %v1177_v39 = vpack.c.bf16 %v1145_v3, %v1141_v59  ;;  %v1133_v10 = vmul.f32 %v1604_v55, %v2209_v15  ;;  %v1137_v22 = vmul.f32 %v1604_v55, %v2215_v40  ;;  %v1612_v30 = vpop.eup %1611  ;;  %v1126_v63 = vmul.f32 %v1610_v47, %v2178_v60  ;;  %v2598_v55 = vld [vmem:[#allocation33_spill] sm:$0xff]  ;;  %v2607_v13 = vld [vmem:[#allocation31_spill] sm:$0xff]  ;;  %v2608_v59 = vld [vmem:[#allocation30_spill] sm:$0xff] }
 0x18e   : > { %v1178_v49 = vpack.c.bf16 %v1146_v24, %v1142_v57  ;;  %v1174_v19 = vpack.c.bf16 %v1138_v2, %v1134_v52  ;;  %v1130_v51 = vmul.f32 %v1610_v47, %v2183_v28  ;;  %v1164_v32 = vpack.c.bf16 %v1120_v12, %v1116_v37  ;;  %v2610_v57 = vld [vmem:[#allocation4_spill] sm:$0xff]  ;;  %v2613_v2 = vld [vmem:[#allocation9_spill] sm:$0xff]  ;;  %v2620_v37 = vld [vmem:[#allocation15_spill] sm:$0xff] }
 0x18f   : > { %1189 = vmatpush1.bf16.msra.mxu0 %v1171_v36  ;;  %v1173_v16 = vpack.c.bf16 %v1137_v22, %v1133_v10  ;;  %v1125_v15 = vmul.f32 %v1612_v30, %v2159_v29  ;;  %v1129_v40 = vmul.f32 %v1612_v30, %v2162_v34  ;;  %v1118_v60 = vmul.f32 %v1610_v47, %v2138_v43  ;;  %v2586_v29 = vld [vmem:[#allocation25_spill] sm:$0xff]  ;;  %v2611_v24 = vld [vmem:[#allocation16_spill] sm:$0xff]  ;;  %v1179_v10 = vld [vmem:[%s243_s23] sm:$0x3] }
 0x190   : > { %1227 = vmatprep.subr.bf16.mxu1 %v1178_v49  ;;  %1190 = vmatprep.subr.bf16.mxu0 %v1168_v46  ;;  %v1170_v48 = vpack.c.bf16 %v1130_v51, %v1126_v63  ;;  %v1122_v28 = vmul.f32 %v1610_v47, %v2154_v7  ;;  %v1163_v9 = vpack.c.bf16 %v1119_v35, %v1115_v1  ;;  %v2590_v7 = vld [vmem:[#allocation20_spill] sm:$0xff]  ;;  %v2619_v46 = vld [vmem:[#allocation19_spill] sm:$0xff]  ;;  %v2623_v22 = vld [vmem:[#allocation5_spill] sm:$0xff] }
 0x191   : > { %1228 = vmatpush1.bf16.msra.mxu1 %v1177_v39  ;;  %v1169_v18 = vpack.c.bf16 %v1129_v40, %v1125_v15  ;;  %v1117_v11 = vmul.f32 %v1612_v30, %v2107_v17  ;;  %v1121_v45 = vmul.f32 %v1612_v30, %v2124_v14  ;;  %v2588_v34 = vpack.c.bf16 %v2586_v29, %v2587_v25  ;;  %v2595_v17 = vld [vmem:[#allocation27_spill] sm:$0xff]  ;;  %v2614_v47 = vld [vmem:[#allocation8_spill] sm:$0xff]  ;;  %v2624_v30 = vld [vmem:[#allocation17_spill] sm:$0xff] }
 0x192   : > { %1229 = vmatprep.subr.bf16.mxu1 %v1174_v19  ;;  %v1166_v44 = vpack.c.bf16 %v1122_v28, %v1118_v60  ;;  %v2591_v61 = vpack.c.bf16 %v2589_v41, %v2590_v7  ;;  %v2597_v14 = vpack.c.bf16 %v2595_v17, %v2596_v54  ;;  %v2600_v62 = vpack.c.bf16 %v2598_v55, %v2599_v8  ;;  %v2626_v63 = vld [vmem:[#allocation11_spill] sm:$0xff]  ;;  %v2627_v51 = vld [vmem:[#allocation10_spill] sm:$0xff] }
 0x193   : > { %1191 = vmatpush1.bf16.msra.mxu0 %v1167_v5  ;;  %v1165_v43 = vpack.c.bf16 %v1121_v45, %v1117_v11  ;;  %v2606_v56 = vpack.c.bf16 %v2604_v0, %v2605_v21  ;;  %v2609_v3 = vpack.c.bf16 %v2607_v13, %v2608_v59  ;;  %v2612_v52 = vpack.c.bf16 %v2610_v57, %v2611_v24 }
 0x194   : > { %1192 = vmatprep.subr.bf16.mxu0 %v1164_v32  ;;  %v2615_v36 = vpack.c.bf16 %v2613_v2, %v2614_v47  ;;  %v2618_v49 = vpack.c.bf16 %v2616_v31, %v2617_v50  ;;  %v2621_v12 = vpack.c.bf16 %v2619_v46, %v2620_v37  ;;  %v2622_v39 = vpack.c.bf16 %v2358_v23, %v2354_v20 }
 0x195   : > { %1230 = vmatpush1.bf16.msra.mxu1 %v1173_v16  ;;  %v2625_v19 = vpack.c.bf16 %v2623_v22, %v2624_v30  ;;  %v2628_v5 = vpack.c.bf16 %v2626_v63, %v2627_v51 }
 0x196   : > { %1231 = vmatprep.subr.bf16.mxu1 %v1170_v48 }
 0x197   : > { %1193 = vmatpush1.bf16.msra.mxu0 %v1163_v9 }
 0x198   : > { %1194 = vmatprep.subr.bf16.mxu0 %v2588_v34 }
 0x199   : > { %1232 = vmatpush1.bf16.msra.mxu1 %v1169_v18 }
 0x19a   : > { %1233 = vmatprep.subr.bf16.mxu1 %v1166_v44 }
 0x19b   : > { %1195 = vmatpush1.bf16.msra.mxu0 %v2591_v61 }
 0x19c   : > { %1196 = vmatprep.subr.bf16.mxu0 %v2594_v53 }
 0x19d   : > { %1234 = vmatpush1.bf16.msra.mxu1 %v1165_v43 }
 0x19e   : > { %1235 = vmatprep.subr.bf16.mxu1 %v2597_v14 }
 0x19f   : > { %1197 = vmatpush1.bf16.msra.mxu0 %v2600_v62 }
 0x1a0   : > { %1198 = vmatprep.subr.bf16.mxu0 %v2603_v26 }
 0x1a1   : > { %1236 = vmatpush1.bf16.msra.mxu1 %v2606_v56 }
 0x1a2   : > { %1237 = vmatprep.subr.bf16.mxu1 %v2609_v3 }
 0x1a3   : > { %1199 = vmatpush1.bf16.msra.mxu0 %v2612_v52 }
 0x1a4   : > { %1200 = vmatprep.subr.bf16.mxu0 %v2615_v36 }
 0x1a5   : > { %1238 = vmatpush1.bf16.msra.mxu1 %v2618_v49 }
 0x1a6   : > { %1239 = vmatprep.subr.bf16.mxu1 %v2621_v12 }
 0x1a7   : > { %1201 = vmatpush1.bf16.msra.mxu0 %v2622_v39 }
 0x1a9   : > { %1240 = vmatpush1.bf16.msra.mxu1 %v2625_v19  ;;  %v1184_v35 = vpop.permute.xlu0 %1183 }
 0x1aa   : > { %1241 = vmatprep.subr.bf16.mxu1 %v2628_v5  ;;  %1219 = vmatmul.mubr.bf16.vlgmr.msra.gmra.mxu0 %v1179_v10 }
 0x1ad   : > { %1242 = vmatpush1.bf16.msra.mxu1 %v1149_v27 }
 0x1b0   : > { %1260 = vmatmul.mubr.bf16.vlgmr.msra.gmra.mxu1 %v1179_v10 }
 0x26a   : > { %v1220_v1 = vpop.f32.mrf.mxu0 }
 0x26b   : > { %v1221_v23 = vadd.f32 %v1220_v1, %v1184_v35 }
 0x26c   : > { %v1222_v32 = vpop.f32.mrf.mxu0 }
 0x26d   : > { %v1223_v20 = vadd.f32 %v1222_v32, %v1184_v35 }
 0x26e   : > { %v1224_v16 = vpop.f32.mrf.mxu0 }
 0x26f   : > { %v1272_v15 = vcombine.low %v1221_v23, %v1223_v20 }
 0x270   : > { %v1261_v40 = vpop.f32.mrf.mxu1  ;;  %v1225_v48 = vpop.f32.mrf.mxu0 }
 0x271   : > { %1276 = vst [vmem:[%s252_s26] sm:$0xff] %v1272_v15  ;;  %v1262_v28 = vadd.f32 %v1261_v40, %v1184_v35 }
 0x272   : > { %v1263_v60 = vpop.f32.mrf.mxu1 }
 0x273   : > { %v1264_v4 = vadd.f32 %v1263_v60, %v1184_v35 }
 0x274   : > { %v1265_v58 = vpop.f32.mrf.mxu1 }
 0x275   : > { %v1273_v27 = vcombine.low %v1262_v28, %v1264_v4 }
 0x276   : > { %v1266_v9 = vpop.f32.mrf.mxu1 }
 0x277   : > { %1277 = vst [vmem:[%s252_s26 + $0x8] sm:$0xff] %v1273_v27 }
 0x278 PF: > { %s14_s17 = sadd.s32 1, %s1635_s17   ;;  %s2629_s15 = smov %s1631_s16 }
 0x279   : > { %p11_p5 = scmp.ge.s32.totalorder %s14_s17, 4   ;;  %s2630_s16 = smov %s2632_s18 }
 0x27b   :  { %13 = sbr.rel (!%p11_p5) target bundleno = 2 (0x2), region = 69 }

</bundles_post_ra>
